<compile_context>
chip_gen: v7x
topology: tpu7x:2x2x1
jax: 0.10.0
libtpu: 0.0.40
codegen_flags: <defaults>
</compile_context>

<pallas_src>
import functools

import jax
import jax.numpy as jnp
from jax.experimental import pallas as pl
from jax.experimental.pallas import tpu as pltpu


def _round_up(x, m):
    return (x + m - 1) // m * m


def _pick_tm(batch):
    """Batch-tile height.

    Multiple of 16 (bf16 sublane packing), large enough to amortize per-step
    overhead (up to 512 on v6e-class chips), and chosen so medium/large
    batches yield >= 2 grid steps for v7x megacore sharding.
    """
    if batch <= 16:
        return 16
    half = _round_up((batch + 1) // 2, 16)
    return min(512, half)


def _linear_softmax_kernel(x_ref, w_ref, b_ref, o_ref):
    """Fused o = softmax(x @ W + b, axis=-1) on one batch tile.

    x_ref: (TM, F)      f32   VMEM (pipelined per grid step)
    w_ref: (F,  N_pad)  bf16  VMEM (resident across grid steps)
    b_ref: (1,  N_pad)  f32   VMEM (resident; padded lanes hold -1e30 mask)
    o_ref: (TM, N_pad)  f32   VMEM
    """
    # bf16 cast feeds the MXU (f32 accumulation); bias add on the f32 tile.
    x_bf16 = x_ref[...].astype(jnp.bfloat16)
    logits = jnp.dot(x_bf16, w_ref[...], preferred_element_type=jnp.float32)
    # Padded W columns are zero and padded bias lanes are -1e30, so padded
    # class lanes contribute exactly 0 to the softmax — no iota/where needed.
    logits = logits + b_ref[...]

    # Numerically-stable softmax over the class axis, all in f32.
    m = jnp.max(logits, axis=-1, keepdims=True)
    e = jnp.exp(logits - m)
    denom = jnp.sum(e, axis=-1, keepdims=True)

    # EUP approx reciprocal + one Newton step (~f32 accuracy, near-free slot).
    inv = pl.reciprocal(denom, approx=True)
    inv = inv * (2.0 - denom * inv)

    o_ref[...] = (e * inv).astype(o_ref.dtype)


def prepare_params(w, b, *, lanes=128):
    """One-off (init-time) parameter prep: pad classes to 128 lanes, cast W to
    bf16, and bake the class-padding mask into the padded bias lanes."""
    F, N = w.shape
    n_pad = _round_up(N, lanes)
    w_p = jnp.zeros((F, n_pad), jnp.bfloat16).at[:, :N].set(w.astype(jnp.bfloat16))
    b_p = jnp.full((1, n_pad), -1e30, jnp.float32).at[0, :N].set(b.astype(jnp.float32))
    return w_p, b_p


@functools.partial(jax.jit, static_argnames=("num_classes",))
def model_with_softmax(x_nchw, w_p, b_p, *, num_classes):
    """x_nchw: (B, C, H, W) f32; w_p: (F, N_pad) bf16; b_p: (1, N_pad) f32.

    Returns (B, num_classes) f32 softmax probabilities.
    """
    B = x_nchw.shape[0]
    F, N_pad = w_p.shape

    # Same row-major flattening as torch .view(B, -1); no copy / no padding.
    x2d = x_nchw.reshape(B, F)

    TM = _pick_tm(B)
    grid = (pl.cdiv(B, TM),)

    out = pl.pallas_call(
        _linear_softmax_kernel,
        out_shape=jax.ShapeDtypeStruct((B, N_pad), jnp.float32),
        grid_spec=pltpu.PrefetchScalarGridSpec(
            num_scalar_prefetch=0,
            grid=grid,
            in_specs=[
                pl.BlockSpec((TM, F), lambda i: (i, 0)),      # x: pipelined tile
                pl.BlockSpec((F, N_pad), lambda i: (0, 0)),   # W: VMEM-resident
                pl.BlockSpec((1, N_pad), lambda i: (0, 0)),   # b: VMEM-resident
            ],
            out_specs=pl.BlockSpec((TM, N_pad), lambda i: (i, 0)),
        ),
        compiler_params=pltpu.CompilerParams(
            dimension_semantics=("parallel",),  # shard batch tiles across TCs (v7x)
        ),
    )(x2d, w_p, b_p)

    # Strip class-lane padding (batch is not padded; ragged tile is masked).
    return out[:, :num_classes]


if __name__ == "__main__":
    key = jax.random.PRNGKey(0)
    k_x, k_w, k_b = jax.random.split(key, 3)

    # Small shapes consistent with a classification forward pass.
    B, C, H, W = 2, 4, 16, 16
    num_classes = 32
    F = C * H * W

    x = jax.random.normal(k_x, (B, C, H, W), dtype=jnp.float32)
    # Deterministic synthetic parameters for the wrapped classifier head.
    w_param = jax.random.normal(k_w, (F, num_classes), dtype=jnp.float32) * 0.02
    b_param = jax.random.normal(k_b, (num_classes,), dtype=jnp.float32) * 0.01

    # Init-time prep (once per model, not per call).
    w_p, b_p = prepare_params(w_param, b_param)

    out = jax.block_until_ready(
        model_with_softmax(x, w_p, b_p, num_classes=num_classes)
    )

    # Sanity check against plain-JAX f32 reference.
    ref = jax.nn.softmax(x.reshape(B, F) @ w_param + b_param, axis=-1)
    assert out.shape == (B, num_classes)
    assert jnp.allclose(jnp.sum(out, axis=-1), 1.0, atol=1e-5)
    # bf16 matmul operands -> slightly looser tolerance than pure-f32 path.
    assert jnp.allclose(out, ref, atol=5e-3, rtol=0)

    print("KERNEL_OK")
</pallas_src>

<mosaic_0001>
module attributes {stable_mosaic.version = 11 : i64} {
  func.func @_linear_softmax_kernel(%arg0: i32, %arg1: memref<16x1024xf32, #tpu.memory_space<vmem>>, %arg2: memref<1024x128xbf16, #tpu.memory_space<vmem>>, %arg3: memref<1x128xf32, #tpu.memory_space<vmem>>, %arg4: memref<16x128xf32, #tpu.memory_space<vmem>>) attributes {dimension_semantics = [#tpu.dimension_semantics<parallel>], iteration_bounds = array<i64: 1>, scalar_prefetch = 0 : i64, scratch_operands = 0 : i64, tpu.core_type = #tpu.core_type<tc>, window_params = [{transform_indices = @transform_0, window_bounds = array<i64: 16, 1024>}, {pipeline_mode = #tpu.pipeline_mode<synchronous>, transform_indices = @transform_1, window_bounds = array<i64: 1024, 128>}, {pipeline_mode = #tpu.pipeline_mode<synchronous>, transform_indices = @transform_2, window_bounds = array<i64: 1, 128>}, {transform_indices = @transform_3, window_bounds = array<i64: 16, 128>}]} {
    %c0 = arith.constant 0 : index
    %c0_0 = arith.constant 0 : index
    %0 = vector.load %arg1[%c0, %c0_0] : memref<16x1024xf32, #tpu.memory_space<vmem>>, vector<16x1024xf32>
    %1 = arith.truncf %0 : vector<16x1024xf32> to vector<16x1024xbf16>
    %c0_1 = arith.constant 0 : index
    %c0_2 = arith.constant 0 : index
    %2 = vector.load %arg2[%c0_1, %c0_2] : memref<1024x128xbf16, #tpu.memory_space<vmem>>, vector<1024x128xbf16>
    %cst = arith.constant dense<0.000000e+00> : vector<16x128xf32>
    %3 = tpu.matmul %1, %2, %cst {dimension_numbers = #tpu.dot_dimension_numbers<[1], [0], [0], [1], [0, 0, 1, 1], [], []>} : vector<16x1024xbf16>, vector<1024x128xbf16>, vector<16x128xf32> -> vector<16x128xf32>
    %c0_3 = arith.constant 0 : index
    %c0_4 = arith.constant 0 : index
    %4 = vector.load %arg3[%c0_3, %c0_4] : memref<1x128xf32, #tpu.memory_space<vmem>>, vector<1x128xf32>
    %5 = vector.broadcast %4 : vector<1x128xf32> to vector<16x128xf32>
    %6 = arith.addf %3, %5 : vector<16x128xf32>
    %cst_5 = arith.constant dense<0xFF800000> : vector<16xf32>
    %7 = vector.multi_reduction <maximumf>, %6, %cst_5 [1] : vector<16x128xf32> to vector<16xf32>
    %8 = vector.shape_cast %7 : vector<16xf32> to vector<16x1xf32>
    %9 = vector.broadcast %8 : vector<16x1xf32> to vector<16x128xf32>
    %10 = arith.subf %6, %9 : vector<16x128xf32>
    %11 = math.exp %10 : vector<16x128xf32>
    %cst_6 = arith.constant dense<0.000000e+00> : vector<16xf32>
    %12 = vector.multi_reduction <add>, %11, %cst_6 [1] : vector<16x128xf32> to vector<16xf32>
    %13 = vector.shape_cast %12 : vector<16xf32> to vector<16x1xf32>
    %14 = tpu.reciprocal %13 {approx = true} : vector<16x1xf32> -> vector<16x1xf32>
    %15 = arith.mulf %13, %14 : vector<16x1xf32>
    %cst_7 = arith.constant 2.000000e+00 : f32
    %16 = vector.broadcast %cst_7 : f32 to vector<16x1xf32>
    %17 = arith.subf %16, %15 : vector<16x1xf32>
    %18 = arith.mulf %14, %17 : vector<16x1xf32>
    %19 = vector.broadcast %18 : vector<16x1xf32> to vector<16x128xf32>
    %20 = arith.mulf %11, %19 : vector<16x128xf32>
    %c0_8 = arith.constant 0 : index
    %c0_9 = arith.constant 0 : index
    %21 = vector.load %arg4[%c0_8, %c0_9] : memref<16x128xf32, #tpu.memory_space<vmem>>, vector<16x128xf32>
    tpu.vector_store %arg4[%c0_8, %c0_9], %20 {strides = array<i32>} : memref<16x128xf32, #tpu.memory_space<vmem>>, vector<16x128xf32>,
    return
  }
  func.func @transform_0(%arg0: i32) -> (i32, i32) {
    %c0_i32 = arith.constant 0 : i32
    %c0_i32_0 = arith.constant 0 : i32
    return %arg0, %c0_i32 : i32, i32
  }
  func.func @transform_1(%arg0: i32) -> (i32, i32) {
    %c0_i32 = arith.constant 0 : i32
    %c0_i32_0 = arith.constant 0 : i32
    %c0_i32_1 = arith.constant 0 : i32
    return %c0_i32, %c0_i32_0 : i32, i32
  }
  func.func @transform_2(%arg0: i32) -> (i32, i32) {
    %c0_i32 = arith.constant 0 : i32
    %c0_i32_0 = arith.constant 0 : i32
    %c0_i32_1 = arith.constant 0 : i32
    return %c0_i32, %c0_i32_0 : i32, i32
  }
  func.func @transform_3(%arg0: i32) -> (i32, i32) {
    %c0_i32 = arith.constant 0 : i32
    %c0_i32_0 = arith.constant 0 : i32
    return %arg0, %c0_i32 : i32, i32
  }
}

</mosaic_0001>

<bundles_post_ra>
// kernel: model_with_softmax.1
= control target key start
LH: loop header
LB: loop body
LE: loop exit
PB: predicated region body
PF: predicated region fallthrough
CT: control target
= control target key end

     0   :  { %8 = vsyncpa [#allocation3], 0  ;;  %s1380_s0 = inlined_call_operand.vmem [shape: f32[2,1024], index: 0, kind: input, shape index: {}]   ;;  %s1381_s1 = inlined_call_operand.hbm [shape: bf16[1024,128], index: 1, kind: input, shape index: {}]   ;;  %s1382_s2 = inlined_call_operand.vmem [shape: f32[1,128], index: 2, kind: input, shape index: {}]   ;;  %s1383_s3 = inlined_call_operand.hbm [shape: f32[2,128], index: 3, kind: output, shape index: {}]  }
   0x1   :  { %9 = vsyncpa [#allocation4], 0  ;;  %s1260_s12 = smov [#allocation2]   ;;  %s1212_s16 = scalar_lea.hbm %s1381_s1, 8192 }
   0x2   :  { %s17_s13 = sshll.u32 %s1260_s12, 4  ;;  %p1213_p0 = scmp.ne.s32.totalorder %s1381_s1, %s1212_s16  ;;  %s18_s13 = int_to_ptr.vmem [resolvable:$true] %s17_s13 }
   0x3   :  { %p1216_p1 = scmp.lt.u32.totalorder %s1212_s16, %s1381_s1 }
   0x5   :  { %p1218_p2 = pnand %p1216_p1, %p1213_p0 }
   0x7   :  { %1221 = shalt.err (!%p1218_p2)
}
   0x8   :  { %s1222_s21 = scalar_lea.vmem %s18_s13, 8192  ;;  %p1227_p4 = scmp.lt.s32.totalorder %s18_s13, %s18_s13 }
   0x9   :  { %p1223_p3 = scmp.ne.s32.totalorder %s18_s13, %s1222_s21  ;;  %p1228_p5 = scmp.lt.s32.totalorder %s1222_s21, %s1222_s21 }
   0xb   :  { %p1229_p6 = por %p1228_p5, %p1227_p4 }
   0xd   :  { %p1230_p7 = pnand %p1229_p6, %p1223_p3 }
   0xf   :  { %1233 = shalt.err (!%p1230_p7)
}
  0x10   :  { %s1261_s22 = smov 64   ;;  %s1262_s23 = smov 4  }
  0x11   :  { %23 = dma.hbm_to_vmem [thread:$0]  %s1381_s1, 8192, %s18_s13, [#allocation3], %s1261_s22, %s1261_s22, %s1262_s23  }
  0x12   :  { %1256 = dma.done.wait [#allocation3], 8192  }
  0x13   :  { %1257 = vsyncadd [#allocation3], 4294959104  ;;  %v1116_v0 = vld [vmem:[#allocation2 + $0x40] sm:$0xff]   ;;  %v1120_v4 = vld [vmem:[#allocation2 + $0x48] sm:$0xff]   ;;  %v1263_v25 = vmov 1983009808   ;;  %v69_v27 = vlaneseq }
  0x14   :  { %v1117_v1 = vld [vmem:[#allocation2 + $0xc0] sm:$0xff]   ;;  %1021 = vmatprep.subr.bf16.mxu0 %v1116_v0  ;;  %v1121_v5 = vld [vmem:[#allocation2 + $0xc8] sm:$0xff]   ;;  %v1124_v8 = vld [vmem:[#allocation2 + $0x50] sm:$0xff]   ;;  %v67_v26 = vunpack.c.l.s4 %v1263_v25 }
  0x15   :  { %v1118_v2 = vld [vmem:[#allocation2] sm:$0xff]   ;;  %1043 = vmatprep.subr.bf16.mxu1 %v1117_v1  ;;  %v1122_v6 = vld [vmem:[#allocation2 + $0x8] sm:$0xff]   ;;  %v1125_v9 = vld [vmem:[#allocation2 + $0xd0] sm:$0xff]   ;;  %v70_v33 = vshrl.u32 %v69_v27, 7 }
  0x16   :  { %v1119_v3 = vld [vmem:[#allocation2 + $0x80] sm:$0xff]   ;;  %1022 = vmatpush3.bf16.msra.mxu0 %v1118_v2  ;;  %v1123_v7 = vld [vmem:[#allocation2 + $0x88] sm:$0xff]   ;;  %v1126_v10 = vld [vmem:[#allocation2 + $0x10] sm:$0xff]   ;;  %v68_v32 = vunpack.c.0.s8 %v67_v26 }
  0x17   :  { %1044 = vmatpush3.bf16.msra.mxu1 %v1119_v3  ;;  %1023 = vmatprep.subr.bf16.mxu0 %v1120_v4  ;;  %v1127_v11 = vld [vmem:[#allocation2 + $0x90] sm:$0xff]   ;;  %v1128_v12 = vld [vmem:[#allocation2 + $0x58] sm:$0xff]   ;;  %v1132_v16 = vld [vmem:[#allocation2 + $0x60] sm:$0xff]  }
  0x18   :  { %1045 = vmatprep.subr.bf16.mxu1 %v1121_v5  ;;  %v1129_v13 = vld [vmem:[#allocation2 + $0xd8] sm:$0xff]   ;;  %v1133_v17 = vld [vmem:[#allocation2 + $0xe0] sm:$0xff]   ;;  %v1136_v20 = vld [vmem:[#allocation2 + $0x68] sm:$0xff]   ;;  %v1299_v37 = vsub.s32 %v68_v32, %v70_v33 }
  0x19   :  { %v1130_v14 = vld [vmem:[#allocation2 + $0x18] sm:$0xff]   ;;  %v1134_v18 = vld [vmem:[#allocation2 + $0x20] sm:$0xff]   ;;  %v1137_v21 = vld [vmem:[#allocation2 + $0xe8] sm:$0xff]  }
  0x1a   :  { %1024 = vmatpush3.bf16.msra.mxu0 %v1122_v6  ;;  %v1131_v15 = vld [vmem:[#allocation2 + $0x98] sm:$0xff]   ;;  %v1135_v19 = vld [vmem:[#allocation2 + $0xa0] sm:$0xff]   ;;  %v1138_v22 = vld [vmem:[#allocation2 + $0x28] sm:$0xff]  }
  0x1b   :  { %1046 = vmatpush3.bf16.msra.mxu1 %v1123_v7  ;;  %1025 = vmatprep.subr.bf16.mxu0 %v1124_v8  ;;  %v1139_v23 = vld [vmem:[#allocation2 + $0xa8] sm:$0xff]   ;;  %v1140_v24 = vld [vmem:[#allocation2 + $0x70] sm:$0xff]   ;;  %v1144_v31 = vld [vmem:[#allocation2 + $0x78] sm:$0xff]  }
  0x1c   :  { %1047 = vmatprep.subr.bf16.mxu1 %v1125_v9  ;;  %v1141_v28 = vld [vmem:[#allocation2 + $0xf0] sm:$0xff]   ;;  %v1145_v34 = vld [vmem:[#allocation2 + $0xf8] sm:$0xff]   ;;  %v1160_v53 = vld [vmem:[#allocation2 + $0x140] sm:$0xff]  }
  0x1d   :  { %v1142_v29 = vld [vmem:[#allocation2 + $0x30] sm:$0xff]   ;;  %v1146_v35 = vld [vmem:[#allocation2 + $0x38] sm:$0xff]   ;;  %v1161_v58 = vld [vmem:[#allocation2 + $0x1c0] sm:$0xff]  }
  0x1e   :  { %1026 = vmatpush3.bf16.msra.mxu0 %v1126_v10  ;;  %v1143_v30 = vld [vmem:[#allocation2 + $0xb0] sm:$0xff]   ;;  %v1147_v36 = vld [vmem:[#allocation2 + $0xb8] sm:$0xff]   ;;  %v1162_v62 = vld [vmem:[#allocation2 + $0x100] sm:$0xff]  }
  0x1f   :  { %1048 = vmatpush3.bf16.msra.mxu1 %v1127_v11  ;;  %1027 = vmatprep.subr.bf16.mxu0 %v1128_v12  ;;  %v1148_v38 = vld [vmem:[%s1380_s0] ss:$16 sps:$4 sm:$0xff]   ;;  %v1156_v43 = vld [vmem:[%s1380_s0 + $0x4] ss:$16 sps:$4 sm:$0xff]   ;;  %v1164_v4 = vld [vmem:[#allocation2 + $0x148] sm:$0xff]  }
  0x20   :  { %1049 = vmatprep.subr.bf16.mxu1 %v1129_v13  ;;  %v1150_v39 = vld [vmem:[%s1380_s0 + $0x20] ss:$16 sps:$4 sm:$0xff]   ;;  %v72_v42 = vrot.slane %v1148_v38, %v1299_v37  ;;  %v1157_v44 = vld [vmem:[%s1380_s0 + $0x24] ss:$16 sps:$4 sm:$0xff]   ;;  %v79_v50 = vrot.slane %v1156_v43, %v1299_v37  ;;  %v1165_v7 = vld [vmem:[#allocation2 + $0x1c8] sm:$0xff]  }
  0x21   :  { %v1152_v40 = vld [vmem:[%s1380_s0 + $0x40] ss:$16 sps:$4 sm:$0xff]   ;;  %v1158_v45 = vld [vmem:[%s1380_s0 + $0x44] ss:$16 sps:$4 sm:$0xff]   ;;  %v86_v46 = vrot.slane %v1150_v39, %v1299_v37  ;;  %v93_v51 = vrot.slane %v1157_v44, %v1299_v37  ;;  %v1166_v8 = vld [vmem:[#allocation2 + $0x108] sm:$0xff]  }
  0x22   :  { %1028 = vmatpush3.bf16.msra.mxu0 %v1130_v14  ;;  %v1154_v41 = vld [vmem:[%s1380_s0 + $0x60] ss:$16 sps:$4 sm:$0xff]   ;;  %v144_v47 = vrot.slane %v1152_v40, %v1299_v37  ;;  %v1159_v49 = vld [vmem:[%s1380_s0 + $0x64] ss:$16 sps:$4 sm:$0xff]   ;;  %v151_v52 = vrot.slane %v1158_v45, %v1299_v37  ;;  %v1167_v9 = vld [vmem:[#allocation2 + $0x188] sm:$0xff]  }
  0x23   :  { %1050 = vmatpush3.bf16.msra.mxu1 %v1131_v15  ;;  %1029 = vmatprep.subr.bf16.mxu0 %v1132_v16  ;;  %v158_v48 = vrot.slane %v1154_v41, %v1299_v37  ;;  %v95_v54 = vcombine.high %v72_v42, %v86_v46  ;;  %v165_v56 = vrot.slane %v1159_v49, %v1299_v37  ;;  %v1163_v2 = vld [vmem:[#allocation2 + $0x180] sm:$0xff]   ;;  %v1168_v10 = vld [vmem:[#allocation2 + $0x150] sm:$0xff]   ;;  %v1172_v14 = vld [vmem:[#allocation2 + $0x158] sm:$0xff]  }
  0x24   :  { %1051 = vmatprep.subr.bf16.mxu1 %v1133_v17  ;;  %v94_v57 = vcombine.low %v72_v42, %v86_v46  ;;  %v97_v59 = vcombine.high %v79_v50, %v93_v51  ;;  %v96_v61 = vcombine.low %v79_v50, %v93_v51  ;;  %v1169_v11 = vld [vmem:[#allocation2 + $0x1d0] sm:$0xff]   ;;  %v1173_v15 = vld [vmem:[#allocation2 + $0x1d8] sm:$0xff]   ;;  %v1183_v25 = vld [vmem:[#allocation2 + $0x1a8] sm:$0xff]  }
  0x25   :  { %v167_v55 = vcombine.high %v144_v47, %v158_v48  ;;  %v166_v60 = vcombine.low %v144_v47, %v158_v48  ;;  %v169_v0 = vcombine.high %v151_v52, %v165_v56  ;;  %v168_v1 = vcombine.low %v151_v52, %v165_v56  ;;  %v1170_v12 = vld [vmem:[#allocation2 + $0x110] sm:$0xff]   ;;  %v1174_v16 = vld [vmem:[#allocation2 + $0x118] sm:$0xff]  }
  0x26   :  { %1030 = vmatpush3.bf16.msra.mxu0 %v1134_v18  ;;  %v1171_v13 = vld [vmem:[#allocation2 + $0x190] sm:$0xff]   ;;  %v1175_v17 = vld [vmem:[#allocation2 + $0x198] sm:$0xff]   ;;  %v1176_v18 = vld [vmem:[#allocation2 + $0x160] sm:$0xff]  }
  0x27   :  { %1052 = vmatpush3.bf16.msra.mxu1 %v1135_v19  ;;  %1031 = vmatprep.subr.bf16.mxu0 %v1136_v20  ;;  %v223_v63 = vpack.c.bf16 %v167_v55, %v95_v54  ;;  %v222_v3 = vpack.c.bf16 %v166_v60, %v94_v57  ;;  %v225_v5 = vpack.c.bf16 %v169_v0, %v97_v59  ;;  %v1177_v19 = vld [vmem:[#allocation2 + $0x1e0] sm:$0xff]   ;;  %v1184_v26 = vld [vmem:[#allocation2 + $0x170] sm:$0xff]   ;;  %v1190_v32 = vld [vmem:[#allocation2 + $0x138] sm:$0xff]  }
  0x28   :  { %1053 = vmatprep.subr.bf16.mxu1 %v1137_v21  ;;  %v224_v6 = vpack.c.bf16 %v168_v1, %v96_v61  ;;  %v1178_v20 = vld [vmem:[#allocation2 + $0x120] sm:$0xff]   ;;  %v1185_v27 = vld [vmem:[#allocation2 + $0x1f0] sm:$0xff]   ;;  %v1191_v33 = vld [vmem:[#allocation2 + $0x1b8] sm:$0xff]  }
  0x29   :  { %781 = vmatprep.mubr.bf16.mxu0 %v223_v63  ;;  %822 = vmatprep.mubr.bf16.mxu1 %v225_v5  ;;  %v1179_v21 = vld [vmem:[#allocation2 + $0x1a0] sm:$0xff]   ;;  %v1198_v38 = vld [vmem:[%s1380_s0 + $0x68] ss:$16 sps:$4 sm:$0xff]   ;;  %v1200_v39 = vld [vmem:[%s1380_s0 + $0xc] ss:$16 sps:$4 sm:$0xff]  }
  0x2a   :  { %1032 = vmatpush3.bf16.msra.mxu0 %v1138_v22  ;;  %v1180_v22 = vld [vmem:[#allocation2 + $0x168] sm:$0xff]   ;;  %v194_v46 = vrot.slane %v1198_v38, %v1299_v37  ;;  %v115_v47 = vrot.slane %v1200_v39, %v1299_v37 }
  0x2b   :  { %1054 = vmatpush3.bf16.msra.mxu1 %v1139_v23  ;;  %1033 = vmatprep.subr.bf16.mxu0 %v1140_v24  ;;  %v1181_v23 = vld [vmem:[#allocation2 + $0x1e8] sm:$0xff]  }
  0x2c   :  { %1055 = vmatprep.subr.bf16.mxu1 %v1141_v28  ;;  %v1182_v24 = vld [vmem:[#allocation2 + $0x128] sm:$0xff]   ;;  %v1186_v28 = vld [vmem:[#allocation2 + $0x130] sm:$0xff]  }
  0x2d   :  { %v1201_v40 = vld [vmem:[%s1380_s0 + $0x2c] ss:$16 sps:$4 sm:$0xff]  }
  0x2e   :  { %1034 = vmatpush3.bf16.msra.mxu0 %v1142_v29  ;;  %v1187_v29 = vld [vmem:[#allocation2 + $0x1b0] sm:$0xff]   ;;  %v1202_v44 = vld [vmem:[%s1380_s0 + $0x4c] ss:$16 sps:$4 sm:$0xff]   ;;  %v129_v48 = vrot.slane %v1201_v40, %v1299_v37 }
  0x2f   :  { %1056 = vmatpush3.bf16.msra.mxu1 %v1143_v30  ;;  %1035 = vmatprep.subr.bf16.mxu0 %v1144_v31  ;;  %v1188_v30 = vld [vmem:[#allocation2 + $0x178] sm:$0xff]   ;;  %v187_v50 = vrot.slane %v1202_v44, %v1299_v37 }
  0x30   :  { %1057 = vmatprep.subr.bf16.mxu1 %v1145_v34  ;;  %v1189_v31 = vld [vmem:[#allocation2 + $0x1f8] sm:$0xff]   ;;  %v133_v54 = vcombine.high %v115_v47, %v129_v48  ;;  %v132_v56 = vcombine.low %v115_v47, %v129_v48 }
  0x31   :  { %v1192_v34 = vld [vmem:[%s1380_s0 + $0x8] ss:$16 sps:$4 sm:$0xff]   ;;  %v1203_v45 = vld [vmem:[%s1380_s0 + $0x6c] ss:$16 sps:$4 sm:$0xff]  }
  0x32   :  { %1036 = vmatpush3.bf16.msra.mxu0 %v1146_v35  ;;  %v1194_v35 = vld [vmem:[%s1380_s0 + $0x28] ss:$16 sps:$4 sm:$0xff]   ;;  %v108_v41 = vrot.slane %v1192_v34, %v1299_v37  ;;  %v201_v51 = vrot.slane %v1203_v45, %v1299_v37 }
  0x33   :  { %1058 = vmatpush3.bf16.msra.mxu1 %v1147_v36  ;;  %1065 = vmatprep.subr.bf16.mxu0 %v1160_v53  ;;  %v1196_v36 = vld [vmem:[%s1380_s0 + $0x48] ss:$16 sps:$4 sm:$0xff]   ;;  %v122_v42 = vrot.slane %v1194_v35, %v1299_v37 }
  0x34   :  { %1087 = vmatprep.subr.bf16.mxu1 %v1161_v58  ;;  %v180_v43 = vrot.slane %v1196_v36, %v1299_v37  ;;  %v205_v57 = vcombine.high %v187_v50, %v201_v51  ;;  %v204_v58 = vcombine.low %v187_v50, %v201_v51  ;;  %v956_v37 = vld [vmem:[%s1382_s2] ss:$0 sm:$0xff] }
  0x35   :  { %782 = vmatmul.mubr.bf16.vlgmr.msra.gmra.mrb[0].mxu0 %v222_v3  ;;  %v131_v49 = vcombine.high %v108_v41, %v122_v42  ;;  %v130_v52 = vcombine.low %v108_v41, %v122_v42 }
  0x36   :  { %1066 = vmatpush3.bf16.msra.mxu0 %v1162_v62  ;;  %823 = vmatmul.mubr.bf16.vlgmr.msra.gmra.mrb[0].mxu1 %v224_v6  ;;  %v203_v53 = vcombine.high %v180_v43, %v194_v46  ;;  %v202_v55 = vcombine.low %v180_v43, %v194_v46  ;;  %v229_v61 = vpack.c.bf16 %v205_v57, %v133_v54 }
  0x37   :  { %1067 = vmatprep.subr.bf16.mxu0 %v1164_v4  ;;  %1088 = vmatpush3.bf16.msra.mxu1 %v1163_v2  ;;  %v228_v62 = vpack.c.bf16 %v204_v58, %v132_v56 }
  0x38   :  { %1089 = vmatprep.subr.bf16.mxu1 %v1165_v7  ;;  %v227_v59 = vpack.c.bf16 %v203_v53, %v131_v49  ;;  %v226_v60 = vpack.c.bf16 %v202_v55, %v130_v52  ;;  %904 = vmatprep.mubr.bf16.mxu1 %v229_v61 }
  0x3a   :  { %1068 = vmatpush3.bf16.msra.mxu0 %v1166_v8  ;;  %863 = vmatprep.mubr.bf16.mxu0 %v227_v59 }
  0x3b   :  { %1069 = vmatprep.subr.bf16.mxu0 %v1168_v10  ;;  %1090 = vmatpush3.bf16.msra.mxu1 %v1167_v9 }
  0x3c   :  { %1091 = vmatprep.subr.bf16.mxu1 %v1169_v11 }
  0x3e   :  { %1070 = vmatpush3.bf16.msra.mxu0 %v1170_v12 }
  0x3f   :  { %1071 = vmatprep.subr.bf16.mxu0 %v1172_v14  ;;  %1092 = vmatpush3.bf16.msra.mxu1 %v1171_v13 }
  0x40   :  { %1093 = vmatprep.subr.bf16.mxu1 %v1173_v15 }
  0x42   :  { %1072 = vmatpush3.bf16.msra.mxu0 %v1174_v16 }
  0x43   :  { %1073 = vmatprep.subr.bf16.mxu0 %v1176_v18  ;;  %1094 = vmatpush3.bf16.msra.mxu1 %v1175_v17 }
  0x44   :  { %1095 = vmatprep.subr.bf16.mxu1 %v1177_v19 }
  0x46   :  { %1074 = vmatpush3.bf16.msra.mxu0 %v1178_v20 }
  0x47   :  { %1075 = vmatprep.subr.bf16.mxu0 %v1180_v22  ;;  %1096 = vmatpush3.bf16.msra.mxu1 %v1179_v21 }
  0x48   :  { %1097 = vmatprep.subr.bf16.mxu1 %v1181_v23 }
  0x4a   :  { %1076 = vmatpush3.bf16.msra.mxu0 %v1182_v24 }
  0x4b   :  { %1077 = vmatprep.subr.bf16.mxu0 %v1184_v26  ;;  %1098 = vmatpush3.bf16.msra.mxu1 %v1183_v25 }
  0x4c   :  { %1099 = vmatprep.subr.bf16.mxu1 %v1185_v27 }
  0x4e   :  { %1078 = vmatpush3.bf16.msra.mxu0 %v1186_v28 }
  0x4f   :  { %1079 = vmatprep.subr.bf16.mxu0 %v1188_v30  ;;  %1100 = vmatpush3.bf16.msra.mxu1 %v1187_v29 }
  0x50   :  { %1101 = vmatprep.subr.bf16.mxu1 %v1189_v31 }
  0x52   :  { %1080 = vmatpush3.bf16.msra.mxu0 %v1190_v32 }
  0x53   :  { %1102 = vmatpush3.bf16.msra.mxu1 %v1191_v33 }
  0x55   :  { %864 = vmatmul.mubr.bf16.vlgmr.msra.gmra.mrb[4].mxu0 %v226_v60 }
  0x56   :  { %905 = vmatmul.mubr.bf16.vlgmr.msra.gmra.mrb[4].mxu1 %v228_v62 }
 0x108   :  { %v1037_v63 = vpop.f32.mrb[0].mxu0 }
 0x109   :  { %v1038_v0 = vpop.f32.mrb[1].mxu0  ;;  %v1059_v1 = vpop.f32.mrb[0].mxu1 }
 0x10a   :  { %v1039_v2 = vadd.f32 %v1038_v0, %v1037_v63  ;;  %v1040_v3 = vpop.f32.mrb[2].mxu0  ;;  %v1060_v4 = vpop.f32.mrb[1].mxu1 }
 0x10b   :  { %v1041_v5 = vpop.f32.mrb[3].mxu0  ;;  %v1061_v7 = vadd.f32 %v1060_v4, %v1059_v1  ;;  %v1062_v8 = vpop.f32.mrb[2].mxu1 }
 0x10c   :  { %v784_v6 = vadd.f32 %v1039_v2, %v956_v37  ;;  %v1042_v9 = vadd.f32 %v1041_v5, %v1040_v3  ;;  %v1063_v10 = vpop.f32.mrb[3].mxu1 }
 0x10d   :  { %v1064_v13 = vadd.f32 %v1063_v10, %v1062_v8 }
 0x10e   :  { %v825_v11 = vadd.f32 %v1061_v7, %v784_v6  ;;  %v787_v12 = vadd.f32 %v1042_v9, %v956_v37 }
 0x110   :  { %v828_v14 = vadd.f32 %v1064_v13, %v787_v12 }
 0x128   :  { %v1081_v15 = vpop.f32.mrb[4].mxu0 }
 0x129   :  { %v1103_v16 = vpop.f32.mrb[4].mxu1  ;;  %v1082_v17 = vpop.f32.mrb[5].mxu0 }
 0x12a   :  { %v1083_v18 = vadd.f32 %v1082_v17, %v1081_v15  ;;  %v1104_v19 = vpop.f32.mrb[5].mxu1  ;;  %v1084_v20 = vpop.f32.mrb[6].mxu0 }
 0x12b   :  { %v1105_v21 = vadd.f32 %v1104_v19, %v1103_v16  ;;  %v1106_v22 = vpop.f32.mrb[6].mxu1  ;;  %v1085_v23 = vpop.f32.mrb[7].mxu0 }
 0x12c   :  { %v866_v24 = vadd.f32 %v1083_v18, %v825_v11  ;;  %v1086_v25 = vadd.f32 %v1085_v23, %v1084_v20  ;;  %v1107_v26 = vpop.f32.mrb[7].mxu1 }
 0x12d   :  { %v1108_v27 = vadd.f32 %v1107_v26, %v1106_v22 }
 0x12e   :  { %v869_v28 = vadd.f32 %v1086_v25, %v828_v14  ;;  %v907_v29 = vadd.f32 %v1105_v21, %v866_v24 }
 0x130   :  { %913 = vmax.xlane.f32.xlu0 %v907_v29  ;;  %v910_v30 = vadd.f32 %v1108_v27, %v869_v28 }
 0x134   :  { %915 = vmax.xlane.f32.xlu0 %v910_v30 }
 0x1bd   :  { %v914_v31 = vpop.xlane.xlu0 %913 }
 0x1be   :  { %v917_v32 = vsub.f32 %v907_v29, %v914_v31 }
 0x1c0   :  { %v919_v33 = vmul.f32 1.442695, %v917_v32 }
 0x1c1   :  { %v916_v34 = vpop.xlane.xlu0 %915 }
 0x1c2   :  { %1204 = vpow2.f32 %v919_v33  ;;  %v918_v35 = vsub.f32 %v910_v30, %v916_v34 }
 0x1c4   :  { %v921_v36 = vmul.f32 1.442695, %v918_v35 }
 0x1c6   :  { %1206 = vpow2.f32 %v921_v36 }
 0x1cc   :  { %v1205_v38 = vpop.eup %1204 }
 0x1cd   :  { %923 = vadd.xlane.f32.xlu1 %v1205_v38 }
 0x1d0   :  { %v1207_v39 = vpop.eup %1206 }
 0x1d1   :  { %925 = vadd.xlane.f32.xlu1 %v1207_v39 }
 0x25a   :  { %v924_v40 = vpop.xlane.xlu1 %923 }
 0x25b   :  { %1208 = vrcp.f32 %v924_v40 }
 0x25e   :  { %v926_v41 = vpop.xlane.xlu1 %925 }
 0x25f   :  { %1210 = vrcp.f32 %v926_v41 }
 0x265   :  { %v1209_v42 = vpop.eup %1208 }
 0x266   :  { %v929_v43 = vmul.f32 %v1209_v42, %v924_v40 }
 0x268   :  { %v931_v44 = vsub.f32 2.0, %v929_v43 }
 0x269   :  { %v1211_v45 = vpop.eup %1210 }
 0x26a   :  { %v933_v46 = vmul.f32 %v1209_v42, %v931_v44  ;;  %v930_v47 = vmul.f32 %v1211_v45, %v926_v41 }
 0x26c   :  { %v935_v48 = vmul.f32 %v1205_v38, %v933_v46  ;;  %v932_v49 = vsub.f32 2.0, %v930_v47 }
 0x26e   :  { %937 = vst [vmem:[#allocation5] sm:$0xff] %v935_v48  ;;  %v934_v50 = vmul.f32 %v1211_v45, %v932_v49 }
 0x270   :  { %v936_v51 = vmul.f32 %v1207_v39, %v934_v50 }
 0x272   :  { %938 = vst [vmem:[#allocation5 + $0x8] sm:$0xff] %v936_v51 }
 0x273   :  { %943 = vsyncadd [#allocation4], 224  ;;  %s1264_s2 = smov [#allocation5]  }
 0x274   :  { %s944_s30 = sshll.u32 %s1264_s2, 4  ;;  %s945_s30 = int_to_ptr.vmem [resolvable:$true] %s944_s30 }
 0x275   :  { %s1234_s4 = scalar_lea.vmem %s945_s30, 32  ;;  %s1238_s5 = scalar_lea.vmem %s945_s30, 256 }
 0x276   :  { %p1235_p8 = scmp.ne.s32.totalorder %s945_s30, %s1234_s4  ;;  %p1239_p9 = scmp.lt.s32.totalorder %s945_s30, %s945_s30 }
 0x277   :  { %p1240_p10 = scmp.lt.s32.totalorder %s1238_s5, %s1234_s4 }
 0x279   :  { %p1241_p11 = por %p1240_p10, %p1239_p9 }
 0x27b   :  { %p1242_p12 = pnand %p1241_p11, %p1235_p8 }
 0x27d   :  { %1245 = shalt.err (!%p1242_p12)
}
 0x27e   :  { %s1246_s8 = scalar_lea.hbm %s1383_s3, 32 }
 0x27f   :  { %p1247_p13 = scmp.ne.s32.totalorder %s1383_s3, %s1246_s8  ;;  %p1250_p0 = scmp.lt.u32.totalorder %s1246_s8, %s1383_s3 }
 0x281   :  { %p1252_p1 = pnand %p1250_p0, %p1247_p13 }
 0x283   :  { %1255 = shalt.err (!%p1252_p1)
}
 0x284   :  { %s1265_s13 = smov 32   ;;  %s1266_s14 = smov 2  }
 0x285   :  { %950 = dma.vmem_to_hbm [thread:$0]  %s945_s30, 32, %s1383_s3, [#allocation4], %s1265_s13, %s1265_s13, %s1266_s14  }
 0x286   :  { %1258 = dma.done.wait [#allocation4], 256  }
 0x287   :  { %1259 = vsyncadd [#allocation4], 4294967040 }
 0x288   :  { %954 = vsyncpa [#allocation3], 1 }
 0x289   :  { %955 = vsyncpa [#allocation4], 1 }

</bundles_post_ra>
